<compile_context>
chip_gen: v7x
topology: tpu7x:2x2x1
jax: 0.10.0
libtpu: 0.0.40
codegen_flags: <defaults>
</compile_context>

<pallas_src>
import functools

import jax
import jax.numpy as jnp
from jax.experimental import pallas as pl
from jax.experimental.pallas import tpu as pltpu


# ---------------------------------------------------------------------------
# Kernel
# ---------------------------------------------------------------------------
def _focal_loss_kernel(x_ref, t_ref, out_ref, *, gamma, alpha_table, hw,
                       tile_n, tiles_per_split, may_need_mask):
    split = pl.program_id(0)          # core-split index (extent 1 or 2)
    i = pl.program_id(2)              # tile index within this split

    x = x_ref[...].astype(jnp.float32)            # (C, T) logits block
    tgt = t_ref[...].astype(jnp.int32)            # (1, T) target block
    C, T = x.shape

    # Numerically-stable log-softmax pieces over the class (sublane) axis.
    # Only ONE exp over the (C, T) block; pt is recovered as s_t / s_sum, so
    # the per-lane exp(logpt) of the previous revision is gone (EUP saving).
    m = jnp.max(x, axis=0, keepdims=True)                       # (1, T)
    e = jnp.exp(x - m)                                          # (C, T)  EUP
    s_sum = jnp.sum(e, axis=0, keepdims=True)                   # (1, T)

    # Fused gather of the target class via a boolean mask (no float one-hot).
    cls = jax.lax.broadcasted_iota(jnp.int32, (C, T), 0)
    sel = cls == tgt                                            # (C, T) bool
    x_t = jnp.sum(jnp.where(sel, x, 0.0), axis=0, keepdims=True)   # (1, T)
    s_t = jnp.sum(jnp.where(sel, e, 0.0), axis=0, keepdims=True)   # (1, T)

    logpt = x_t - m - jnp.log(s_sum)                            # log p_t
    inv = pl.reciprocal(s_sum, approx=True)                     # EUP, ~free
    # (s_sum - s_t)/s_sum is both cheaper (no 2nd exp) and more accurate than
    # 1 - exp(logpt) for easy classes; clamp guards the approx reciprocal.
    one_minus_pt = jnp.maximum((s_sum - s_t) * inv, 0.0)        # (1, T)

    if alpha_table is not None:
        # alpha[target] via a short unrolled select chain over the (1, T)
        # target; table entries are compile-time constants.  Mirrors the
        # PyTorch gather-by-target-value convention for any C.
        at = jnp.zeros_like(logpt)
        for c, a_c in enumerate(alpha_table):
            at = jnp.where(tgt == c, a_c, at)
        logpt = logpt * at                  # pt stays unweighted (as PyTorch)

    if gamma == 0.0:
        loss = -logpt
    elif float(gamma).is_integer() and 0.0 < gamma <= 8.0:
        focal = one_minus_pt
        for _ in range(int(gamma) - 1):
            focal = focal * one_minus_pt
        loss = -focal * logpt
    else:
        loss = -jnp.power(one_minus_pt, gamma) * logpt

    # Per-lane accumulation into the resident per-(batch, split) output block.
    @pl.when(i == 0)
    def _init():
        out_ref[...] = jnp.zeros_like(out_ref)

    if may_need_mask:
        g = split * tiles_per_split + i            # global (unclamped) tile idx
        start = g * tile_n
        full = start + tile_n <= hw                # tile fully inside H*W?

        @pl.when(full)
        def _acc_full():
            out_ref[...] += loss

        @pl.when(jnp.logical_not(full))
        def _acc_tail():
            # Padded lanes may hold garbage (any Inf/NaN stays confined to its
            # lane); the select zeroes them before they touch the accumulator.
            col = start + jax.lax.broadcasted_iota(jnp.int32, (1, T), 1)
            out_ref[...] += jnp.where(col < hw, loss, 0.0)
    else:
        out_ref[...] += loss


# ---------------------------------------------------------------------------
# Wrapper-side sizing helpers
# ---------------------------------------------------------------------------
def _pick_vmem_limit():
    """Generation-aware scoped VMEM limit (48 MiB on v7x, 64 MiB on v5e/v6e)."""
    try:
        cap = int(pltpu.get_tpu_info().vmem_capacity_bytes)
    except Exception:
        cap = 0
    if cap <= 0:
        cap = 64 * 1024 * 1024          # assume v7x-sized VMEM if query fails
    return min((cap * 3) // 4, 64 * 1024 * 1024)


def _choose_tile_n(hw, c, logit_itemsize, tgt_itemsize, vmem_limit_bytes,
                   *, target_block_bytes=2 * 1024 * 1024, max_tile_n=None):
    """Lane tile sized by bytes-per-step (~2 MiB logits block), VMEM-bounded."""
    hw_rounded = pl.cdiv(hw, 128) * 128
    tile = (target_block_bytes // max(1, c * logit_itemsize)) // 128 * 128
    tile = max(128, min(tile, hw_rounded))
    if max_tile_n is not None:
        tile = max(128, min(tile, (max_tile_n // 128) * 128))

    budget = (vmem_limit_bytes * 7) // 10          # same limit as CompilerParams

    def need(t):
        in_bufs = 2 * (c * t * logit_itemsize + t * tgt_itemsize)  # dbl-buffered
        out_bufs = 2 * t * 4
        temps = (3 * c + 10) * t * 4               # live f32/bool temporaries
        return in_bufs + out_bufs + temps

    while tile > 128 and need(tile) > budget:
        tile = max(128, ((tile // 2) // 128) * 128)
    return tile


def _alpha_table(alpha):
    """Mirror the PyTorch module's alpha handling as a tuple of floats."""
    if alpha is None:
        return None
    if isinstance(alpha, (float, int)) and not isinstance(alpha, bool):
        a = float(alpha)
        return (a, 1.0 - a)                        # torch.Tensor([a, 1 - a])
    return tuple(float(v) for v in alpha)          # list / tuple / 1-D weights


# ---------------------------------------------------------------------------
# Public wrapper
# ---------------------------------------------------------------------------
def focal_loss_pallas(logits_nchw, target, *, gamma=0.0, alpha=None,
                      size_average=True, max_tile_n=None,
                      target_block_bytes=2 * 1024 * 1024):
    B, C, H, W = logits_nchw.shape
    HW = H * W
    N = B * HW
    assert HW > 0 and N < 2 ** 31, "sample count overflows int32 lane indexing"

    # Free views, no transpose / pad copies before the kernel.
    x = logits_nchw.reshape(B, C, HW)
    t = target.reshape(B, 1, HW)
    if not jnp.issubdtype(t.dtype, jnp.integer):
        t = t.astype(jnp.int32)        # int8/int16/int32 targets stream as-is

    alpha_tab = _alpha_table(alpha)

    vmem_limit = _pick_vmem_limit()
    tile_n = _choose_tile_n(HW, C,
                            jnp.dtype(x.dtype).itemsize,
                            jnp.dtype(t.dtype).itemsize,
                            vmem_limit,
                            target_block_bytes=target_block_bytes,
                            max_tile_n=max_tile_n)
    n_tiles = pl.cdiv(HW, tile_n)

    # v7x has 2 TensorCores; with B == 1 the batch axis alone can't feed both,
    # so split the tile axis 2-way into independent accumulator rows (kept as
    # a "parallel" grid axis).  Harmless on 1-TC chips (v5e/v6e).
    S = 2 if (B == 1 and n_tiles >= 4) else 1
    tps = pl.cdiv(n_tiles, S)
    may_need_mask = (HW % tile_n != 0) or (S * tps != n_tiles)

    if S * tps == n_tiles:
        def tile_idx(s, i):
            return s * tps + i
    else:
        last_tile = n_tiles - 1

        def tile_idx(s, i):
            # Clamp the duplicate (out-of-range) tile of the last split onto a
            # valid block; its contribution is fully masked in the kernel.
            return jnp.minimum(s * tps + i, last_tile)

    kernel = functools.partial(
        _focal_loss_kernel,
        gamma=float(gamma),
        alpha_table=alpha_tab,
        hw=int(HW),
        tile_n=int(tile_n),
        tiles_per_split=int(tps),
        may_need_mask=bool(may_need_mask),
    )

    partials = pl.pallas_call(
        kernel,
        out_shape=jax.ShapeDtypeStruct((B * S, 1, tile_n), jnp.float32),
        grid_spec=pltpu.PrefetchScalarGridSpec(
            num_scalar_prefetch=0,
            grid=(S, B, tps),
            in_specs=[
                pl.BlockSpec((None, C, tile_n),
                             lambda s, b, i: (b, 0, tile_idx(s, i))),
                pl.BlockSpec((None, 1, tile_n),
                             lambda s, b, i: (b, 0, tile_idx(s, i))),
            ],
            out_specs=pl.BlockSpec((None, 1, tile_n),
                                   lambda s, b, i: (b * S + s, 0, 0)),
        ),
        compiler_params=pltpu.CompilerParams(
            dimension_semantics=("parallel", "parallel", "arbitrary"),
            vmem_limit_bytes=int(vmem_limit)),
    )(x, t)

    total = jnp.sum(partials)                       # tiny final reduce in XLA
    if size_average:
        total = total / jnp.float32(N)
    return total


# ---------------------------------------------------------------------------
# Pure-JAX reference (mirrors the PyTorch forward)
# ---------------------------------------------------------------------------
def focal_loss_ref(logits_nchw, target, *, gamma, alpha_table, size_average):
    B, C, H, W = logits_nchw.shape
    x = logits_nchw.transpose(0, 2, 3, 1).reshape(-1, C).astype(jnp.float32)
    t = target.reshape(-1).astype(jnp.int32)
    logsm = jax.nn.log_softmax(x, axis=1)
    logpt = jnp.take_along_axis(logsm, t[:, None], axis=1)[:, 0]
    pt = jnp.exp(logpt)
    if alpha_table is not None:
        at = jnp.asarray(alpha_table, jnp.float32)[t]
        logpt = logpt * at
    loss = -((1.0 - pt) ** gamma) * logpt
    return loss.mean() if size_average else loss.sum()


if __name__ == "__main__":
    key = jax.random.PRNGKey(0)
    k1, k2, k3, k4 = jax.random.split(key, 4)

    # Case 1: small NCHW problem, per-class alpha list, mean reduction.
    B, C, H, W = 2, 4, 16, 16
    alpha1 = [0.1, 0.2, 0.3, 0.4]
    logits1 = jax.random.normal(k1, (B, C, H, W), dtype=jnp.float32)
    target1 = jax.random.randint(k2, (B, 1, H, W), 0, C, dtype=jnp.int32)
    out1 = focal_loss_pallas(logits1, target1, gamma=2.0, alpha=alpha1,
                             size_average=True)
    out1 = jax.block_until_ready(out1)
    ref1 = focal_loss_ref(logits1, target1, gamma=2.0,
                          alpha_table=_alpha_table(alpha1), size_average=True)
    assert jnp.allclose(out1, ref1, rtol=2e-3, atol=1e-5), (out1, ref1)

    # Case 2: B == 1 (exercises the 2-way core split), scalar alpha, ragged
    # tail via a forced small tile, sum reduction.
    B2, C2, H2, W2 = 1, 2, 48, 48
    logits2 = jax.random.normal(k3, (B2, C2, H2, W2), dtype=jnp.float32)
    target2 = jax.random.randint(k4, (B2, 1, H2, W2), 0, C2, dtype=jnp.int32)
    out2 = focal_loss_pallas(logits2, target2, gamma=3.0, alpha=0.25,
                             size_average=False, max_tile_n=512)
    out2 = jax.block_until_ready(out2)
    ref2 = focal_loss_ref(logits2, target2, gamma=3.0,
                          alpha_table=_alpha_table(0.25), size_average=False)
    assert jnp.allclose(out2, ref2, rtol=2e-3, atol=1e-4), (out2, ref2)

    print("KERNEL_OK")
</pallas_src>

<mosaic_0001>
module attributes {stable_mosaic.version = 11 : i64} {
  func.func @_focal_loss_kernel(%arg0: i32, %arg1: i32, %arg2: i32, %arg3: memref<1x4x256xf32, #tpu.memory_space<vmem>>, %arg4: memref<1x1x256xi32, #tpu.memory_space<vmem>>, %arg5: memref<1x1x256xf32, #tpu.memory_space<vmem>>) attributes {dimension_semantics = [#tpu.dimension_semantics<parallel>, #tpu.dimension_semantics<parallel>, #tpu.dimension_semantics<arbitrary>], iteration_bounds = array<i64: 1, 2, 1>, scalar_prefetch = 0 : i64, scratch_operands = 0 : i64, tpu.core_type = #tpu.core_type<tc>, window_params = [{transform_indices = @transform_0, window_bounds = array<i64: 1, 4, 256>}, {transform_indices = @transform_1, window_bounds = array<i64: 1, 1, 256>}, {transform_indices = @transform_2, window_bounds = array<i64: 1, 1, 256>}]} {
    %c0 = arith.constant 0 : index
    %c0_0 = arith.constant 0 : index
    %c0_1 = arith.constant 0 : index
    %0 = vector.load %arg3[%c0, %c0_0, %c0_1] : memref<1x4x256xf32, #tpu.memory_space<vmem>>, vector<1x4x256xf32>
    %1 = vector.shape_cast %0 : vector<1x4x256xf32> to vector<4x256xf32>
    %c0_2 = arith.constant 0 : index
    %c0_3 = arith.constant 0 : index
    %c0_4 = arith.constant 0 : index
    %2 = vector.load %arg4[%c0_2, %c0_3, %c0_4] : memref<1x1x256xi32, #tpu.memory_space<vmem>>, vector<1x1x256xi32>
    %3 = vector.shape_cast %2 : vector<1x1x256xi32> to vector<1x256xi32>
    %cst = arith.constant dense<0xFF800000> : vector<256xf32>
    %4 = vector.multi_reduction <maximumf>, %1, %cst [0] : vector<4x256xf32> to vector<256xf32>
    %5 = vector.shape_cast %4 : vector<256xf32> to vector<1x256xf32>
    %6 = vector.broadcast %5 : vector<1x256xf32> to vector<4x256xf32>
    %7 = arith.subf %1, %6 : vector<4x256xf32>
    %8 = math.exp %7 : vector<4x256xf32>
    %cst_5 = arith.constant dense<0.000000e+00> : vector<256xf32>
    %9 = vector.multi_reduction <add>, %8, %cst_5 [0] : vector<4x256xf32> to vector<256xf32>
    %10 = vector.shape_cast %9 : vector<256xf32> to vector<1x256xf32>
    %11 = tpu.iota {dimensions = array<i32: 0>} : vector<4x256xi32>
    %12 = vector.broadcast %3 : vector<1x256xi32> to vector<4x256xi32>
    %13 = arith.cmpi eq, %11, %12 : vector<4x256xi32>
    %cst_6 = arith.constant 0.000000e+00 : f32
    %14 = vector.broadcast %cst_6 : f32 to vector<4x256xf32>
    %15 = arith.select %13, %1, %14 : vector<4x256xi1>, vector<4x256xf32>
    %cst_7 = arith.constant dense<0.000000e+00> : vector<256xf32>
    %16 = vector.multi_reduction <add>, %15, %cst_7 [0] : vector<4x256xf32> to vector<256xf32>
    %17 = vector.shape_cast %16 : vector<256xf32> to vector<1x256xf32>
    %cst_8 = arith.constant 0.000000e+00 : f32
    %18 = vector.broadcast %cst_8 : f32 to vector<4x256xf32>
    %19 = arith.select %13, %8, %18 : vector<4x256xi1>, vector<4x256xf32>
    %cst_9 = arith.constant dense<0.000000e+00> : vector<256xf32>
    %20 = vector.multi_reduction <add>, %19, %cst_9 [0] : vector<4x256xf32> to vector<256xf32>
    %21 = vector.shape_cast %20 : vector<256xf32> to vector<1x256xf32>
    %22 = arith.subf %17, %5 : vector<1x256xf32>
    %23 = math.log %10 : vector<1x256xf32>
    %24 = arith.subf %22, %23 : vector<1x256xf32>
    %25 = tpu.reciprocal %10 {approx = true} : vector<1x256xf32> -> vector<1x256xf32>
    %26 = arith.subf %10, %21 : vector<1x256xf32>
    %27 = arith.mulf %26, %25 : vector<1x256xf32>
    %cst_10 = arith.constant 0.000000e+00 : f32
    %28 = vector.broadcast %cst_10 : f32 to vector<1x256xf32>
    %29 = arith.maximumf %27, %28 : vector<1x256xf32>
    %cst_11 = arith.constant 0.000000e+00 : f32
    %30 = vector.broadcast %cst_11 : f32 to vector<1x256xf32>
    %c0_i32 = arith.constant 0 : i32
    %31 = vector.broadcast %c0_i32 : i32 to vector<1x256xi32>
    %32 = arith.cmpi eq, %3, %31 : vector<1x256xi32>
    %cst_12 = arith.constant 1.000000e-01 : f32
    %33 = vector.broadcast %cst_12 : f32 to vector<1x256xf32>
    %34 = arith.select %32, %33, %30 : vector<1x256xi1>, vector<1x256xf32>
    %c1_i32 = arith.constant 1 : i32
    %35 = vector.broadcast %c1_i32 : i32 to vector<1x256xi32>
    %36 = arith.cmpi eq, %3, %35 : vector<1x256xi32>
    %cst_13 = arith.constant 2.000000e-01 : f32
    %37 = vector.broadcast %cst_13 : f32 to vector<1x256xf32>
    %38 = arith.select %36, %37, %34 : vector<1x256xi1>, vector<1x256xf32>
    %c2_i32 = arith.constant 2 : i32
    %39 = vector.broadcast %c2_i32 : i32 to vector<1x256xi32>
    %40 = arith.cmpi eq, %3, %39 : vector<1x256xi32>
    %cst_14 = arith.constant 3.000000e-01 : f32
    %41 = vector.broadcast %cst_14 : f32 to vector<1x256xf32>
    %42 = arith.select %40, %41, %38 : vector<1x256xi1>, vector<1x256xf32>
    %c3_i32 = arith.constant 3 : i32
    %43 = vector.broadcast %c3_i32 : i32 to vector<1x256xi32>
    %44 = arith.cmpi eq, %3, %43 : vector<1x256xi32>
    %cst_15 = arith.constant 4.000000e-01 : f32
    %45 = vector.broadcast %cst_15 : f32 to vector<1x256xf32>
    %46 = arith.select %44, %45, %42 : vector<1x256xi1>, vector<1x256xf32>
    %47 = arith.mulf %24, %46 : vector<1x256xf32>
    %48 = arith.mulf %29, %29 : vector<1x256xf32>
    %cst_16 = arith.constant 0.000000e+00 : f32
    %49 = vector.broadcast %cst_16 : f32 to vector<1x256xf32>
    %50 = arith.subf %49, %48 : vector<1x256xf32>
    %51 = arith.mulf %50, %47 : vector<1x256xf32>
    %c0_i32_17 = arith.constant 0 : i32
    %52 = arith.cmpi eq, %arg2, %c0_i32_17 : i32
    %53 = arith.extui %52 : i1 to i32
    %c0_i32_18 = arith.constant 0 : i32
    %54 = arith.cmpi ne, %53, %c0_i32_18 : i32
    scf.if %54 {
      %cst_25 = arith.constant 0.000000e+00 : f32
      %61 = vector.broadcast %cst_25 : f32 to vector<1x256xf32>
      %c0_26 = arith.constant 0 : index
      %c0_27 = arith.constant 0 : index
      %c0_28 = arith.constant 0 : index
      %62 = vector.load %arg5[%c0_26, %c0_27, %c0_28] : memref<1x1x256xf32, #tpu.memory_space<vmem>>, vector<1x1x256xf32>
      %63 = vector.shape_cast %62 : vector<1x1x256xf32> to vector<1x256xf32>
      %64 = vector.shape_cast %61 : vector<1x256xf32> to vector<1x1x256xf32>
      tpu.vector_store %arg5[%c0_26, %c0_27, %c0_28], %64 {strides = array<i32>} : memref<1x1x256xf32, #tpu.memory_space<vmem>>, vector<1x1x256xf32>,
    } else {
    }
    %c0_19 = arith.constant 0 : index
    %c0_20 = arith.constant 0 : index
    %c0_21 = arith.constant 0 : index
    %55 = vector.load %arg5[%c0_19, %c0_20, %c0_21] : memref<1x1x256xf32, #tpu.memory_space<vmem>>, vector<1x1x256xf32>
    %56 = vector.shape_cast %55 : vector<1x1x256xf32> to vector<1x256xf32>
    %57 = arith.addf %56, %51 : vector<1x256xf32>
    %c0_22 = arith.constant 0 : index
    %c0_23 = arith.constant 0 : index
    %c0_24 = arith.constant 0 : index
    %58 = vector.load %arg5[%c0_22, %c0_23, %c0_24] : memref<1x1x256xf32, #tpu.memory_space<vmem>>, vector<1x1x256xf32>
    %59 = vector.shape_cast %58 : vector<1x1x256xf32> to vector<1x256xf32>
    %60 = vector.shape_cast %57 : vector<1x256xf32> to vector<1x1x256xf32>
    tpu.vector_store %arg5[%c0_22, %c0_23, %c0_24], %60 {strides = array<i32>} : memref<1x1x256xf32, #tpu.memory_space<vmem>>, vector<1x1x256xf32>,
    return
  }
  func.func @transform_0(%arg0: i32, %arg1: i32, %arg2: i32) -> (i32, i32, i32) {
    %c1_i32 = arith.constant 1 : i32
    %0 = arith.muli %arg0, %c1_i32 : i32
    %1 = arith.addi %0, %arg2 : i32
    %c0_i32 = arith.constant 0 : i32
    %c0_i32_0 = arith.constant 0 : i32
    return %arg1, %c0_i32, %1 : i32, i32, i32
  }
  func.func @transform_1(%arg0: i32, %arg1: i32, %arg2: i32) -> (i32, i32, i32) {
    %c1_i32 = arith.constant 1 : i32
    %0 = arith.muli %arg0, %c1_i32 : i32
    %1 = arith.addi %0, %arg2 : i32
    %c0_i32 = arith.constant 0 : i32
    %c0_i32_0 = arith.constant 0 : i32
    return %arg1, %c0_i32, %1 : i32, i32, i32
  }
  func.func @transform_2(%arg0: i32, %arg1: i32, %arg2: i32) -> (i32, i32, i32) {
    %c1_i32 = arith.constant 1 : i32
    %0 = arith.muli %arg1, %c1_i32 : i32
    %1 = arith.addi %0, %arg0 : i32
    %c0_i32 = arith.constant 0 : i32
    %c0_i32_0 = arith.constant 0 : i32
    %c0_i32_1 = arith.constant 0 : i32
    return %1, %c0_i32, %c0_i32_0 : i32, i32, i32
  }
}

</mosaic_0001>

<bundles_post_ra>
// kernel: tpu_custom_call.1
= control target key start
LH: loop header
LB: loop body
LE: loop exit
PB: predicated region body
PF: predicated region fallthrough
CT: control target
= control target key end

     0   :  { %7 = vsyncpa [#allocation3], 0  ;;  %s1072_s0 = inlined_call_operand.hbm [shape: f32[2,4,256], index: 0, kind: input, shape index: {}]   ;;  %s1073_s1 = inlined_call_operand.hbm [shape: s32[2,1,256], index: 1, kind: input, shape index: {}]   ;;  %s1074_s2 = inlined_call_operand.hbm [shape: f32[2,1,256], index: 2, kind: output, shape index: {}]  }
   0x1   :  { %9 = vsyncpa [#allocation3 + $0x1], 0 }
   0x2   :  { %10 = vsyncpa [#allocation6], 0 }
   0x3   :  { %12 = vsyncpa [#allocation6 + $0x1], 0 }
   0x4   :  { %13 = vsyncpa [#allocation4], 0 }
   0x5   :  { %15 = vsyncpa [#allocation4 + $0x1], 0  ;;  %s802_s9 = smov 0   ;;  %s804_s10 = smov 0  }
   0x6   :  { %s806_s11 = smov 0   ;;  %s808_s12 = smov 0  }
   0x7   :  { %s810_s13 = smov 0   ;;  %s812_s14 = smov 0  }
   0x8 LB: > { %s532_s15 = sadd.s32 4294967295, %s780_s14   ;;  %s533_s16 = sadd.s32 4294967294, %s780_s14   ;;  %s780_s14 = sphi %s812_s14, %s21_s14   ;;  %s776_s13 = sphi %s810_s13, %s1096_s13   ;;  %s772_s12 = sphi %s808_s12, %s1095_s12   ;;  %s768_s11 = sphi %s806_s11, %s1094_s11   ;;  %s764_s10 = sphi %s804_s10, %s1093_s10   ;;  %s760_s9 = sphi %s802_s9, %s1092_s9  }
   0x9   : > { %s36_s17 = sadd.s32 1, %s776_s13  ;;  %s51_s18 = sadd.s32 1, %s768_s11 }
   0xa   : > { %p38_p0 = scmp.ge.s32.totalorder %s36_s17, 2  ;;  %p58_p1 = scmp.ne.s32.totalorder %s768_s11, %s764_s10 }
   0xb   : > { %p59_p2 = scmp.eq.s32.totalorder %s780_s14, 0  ;;  %p64_p3 = scmp.ne.s32.totalorder %s764_s10, %s760_s9 }
   0xc   : > { %s1098_s17 = smov (%p38_p0, %s36_s17), 0  ;;  %p65_p5 = scmp.eq.s32.totalorder %s532_s15, 0 }
   0xd   : > { %p843_p4 = por %p59_p2, %p58_p1  ;;  %s46_s20 = ssub.s32 %s776_s13, %s1098_s17 }
   0xe   : > { %p120_p6 = scmp.eq.s32.totalorder %s532_s15, 1  ;;  %p49_p7 = scmp.eq.s32.totalorder %s46_s20, 0 }
   0xf   : > { %p849_p8 = por %p65_p5, %p64_p3  ;;  %p126_p10 = scmp.eq.s32.totalorder %s533_s16, 1 }
  0x10   : > { %p853_p9 = por %p120_p6, %p58_p1  ;;  %p571_p13 = scmp.lt.s32.totalorder %s780_s14, 2 }
  0x11   : > { %s1078_s21 = scalar_select %p849_p8, 1, 0 }
  0x12   : > { %s1079_s22 = scalar_select %p853_p9, 1, 0 }
  0x13   : > { %s858_s23 = scalar_select %p49_p7, %s768_s11, %s51_s18  }
  0x14   : > { %p860_p11 = por %p126_p10, %p64_p3  ;;  %s867_s25 = sand.u32 1, %s768_s11  }
  0x15   : > { %s536_s26 = sshll.u32 %s867_s25, 3  ;;  %s551_s27 = sshll.u32 %s776_s13, 7 }
  0x16   : > { %s1080_s24 = scalar_select %p860_p11, 1, 0 }
  0x17   : > { %s874_s30 = scalar_lea.hbm %s1072_s0, %s551_s27  ;;  %s150_s3 = scalar_lea.vmem [#allocation2], %s536_s26 }
  0x18   : > { %s161_s4 = sshll.u32 %s150_s3, 4  ;;  %p880_p0 = pnand %p571_p13, %p843_p4  ;;  %s876_s4 = int_to_ptr.vmem [resolvable:$true] %s161_s4 }
  0x19   : > { %s147_s6 = scalar_lea.sflag [#allocation3], %s867_s25  ;;  %s634_s7 = scalar_lea.hbm %s874_s30, 128 }
  0x1a   : > { %p635_p3 = scmp.ne.s32.totalorder %s874_s30, %s634_s7  ;;  %p636_p5 = pneg %p880_p0 }
  0x1b   : > { %s639_s16 = scalar_lea.hbm %s1072_s0, 256  ;;  %p640_p4 = scmp.lt.u32.totalorder %s874_s30, %s1072_s0 }
  0x1c   : > { %p637_p6 = pnand %p636_p5, %p635_p3  ;;  %p641_p10 = scmp.lt.u32.totalorder %s639_s16, %s634_s7 }
  0x1d   : > { %p643_p12 = scmp.lt.u32.totalorder %s634_s7, %s874_s30 }
  0x1e   : > { %p638_p7 = pneg %p637_p6  ;;  %p642_p13 = por %p641_p10, %p640_p4 }
  0x20   : > { %p644_p1 = por %p643_p12, %p642_p13 }
  0x22   : > { %p645_p2 = pnand %p644_p1, %p638_p7 }
  0x24   : > { %648 = shalt.err (!%p645_p2)
}
  0x25   : > { %s649_s20 = scalar_lea.vmem %s876_s4, 128  ;;  %s782_s26 = smov [#allocation2]  }
  0x26   : > { %p650_p3 = scmp.ne.s32.totalorder %s876_s4, %s649_s20  ;;  %s654_s27 = sshll.u32 %s782_s26, 4  ;;  %s655_s27 = int_to_ptr.vmem [resolvable:$false] %s654_s27 }
  0x27   : > { %s656_s28 = scalar_lea.vmem %s655_s27, 256  ;;  %p657_p9 = scmp.lt.s32.totalorder %s876_s4, %s655_s27 }
  0x28   : > { %p652_p6 = pnand %p650_p3, %p636_p5  ;;  %p658_p4 = scmp.lt.s32.totalorder %s656_s28, %s649_s20 }
  0x2a   : > { %p653_p11 = pneg %p652_p6  ;;  %p659_p10 = por %p658_p4, %p657_p9 }
  0x2c   : > { %p660_p12 = pnand %p659_p10, %p653_p11 }
  0x2e   : > { %663 = shalt.err (!%p660_p12)
}
  0x2f   : > { %563 = dma.hbm_to_vmem [thread:$0]  (!%p880_p0), %s874_s30, 128, %s876_s4, %s147_s6  }
  0x30   : > { %p1082_p1 = scmp.lt.s32.totalorder %s780_s14, 3  ;;  %p1083_p2 = scmp.ge.s32.totalorder %s780_s14, 1 }
  0x31   : > { %s539_s3 = sshll.u32 %s867_s25, 1  ;;  %s552_s7 = sshll.u32 %s776_s13, 5 }
  0x32   : > { %p916_p7 = pnand %p1083_p2, %p1082_p1  ;;  %s925_s16 = scalar_lea.hbm %s1073_s1, %s552_s7 }
  0x33   : > { %s172_s18 = scalar_lea.vmem [#allocation5], %s539_s3  ;;  %s169_s30 = scalar_lea.sflag [#allocation6], %s867_s25 }
  0x34   : > { %s1084_s29 = scalar_select %p916_p7, 1, 0 }
  0x35   : > { %s183_s19 = sshll.u32 %s172_s18, 4  ;;  %s664_s4 = scalar_lea.hbm %s925_s16, 32  ;;  %s184_s19 = int_to_ptr.vmem [resolvable:$true] %s183_s19 }
  0x36   : > { %p665_p9 = scmp.ne.s32.totalorder %s925_s16, %s664_s4  ;;  %s669_s26 = scalar_lea.hbm %s1073_s1, 64 }
  0x37   : > { %p670_p3 = scmp.lt.u32.totalorder %s925_s16, %s1073_s1  ;;  %p671_p6 = scmp.lt.u32.totalorder %s669_s26, %s664_s4 }
  0x38   : > { %p667_p11 = pnand %p665_p9, %p636_p5  ;;  %p673_p10 = scmp.lt.u32.totalorder %s664_s4, %s925_s16 }
  0x39   : > { %p672_p4 = por %p671_p6, %p670_p3 }
  0x3a   : > { %p668_p13 = pneg %p667_p11 }
  0x3b   : > { %p674_p12 = por %p673_p10, %p672_p4 }
  0x3d   : > { %p675_p1 = pnand %p674_p12, %p668_p13 }
  0x3f   : > { %678 = shalt.err (!%p675_p1)
}
  0x40   : > { %s679_s25 = scalar_lea.vmem %s184_s19, 32  ;;  %s783_s3 = smov [#allocation5]  }
  0x41   : > { %p680_p2 = scmp.ne.s32.totalorder %s184_s19, %s679_s25  ;;  %s684_s7 = sshll.u32 %s783_s3, 4  ;;  %s685_s7 = int_to_ptr.vmem [resolvable:$false] %s684_s7 }
  0x42   : > { %s686_s8 = scalar_lea.vmem %s685_s7, 64  ;;  %p687_p8 = scmp.lt.s32.totalorder %s184_s19, %s685_s7 }
  0x43   : > { %p682_p9 = pnand %p680_p2, %p636_p5  ;;  %p688_p7 = scmp.lt.s32.totalorder %s686_s8, %s679_s25 }
  0x45   : > { %p683_p11 = pneg %p682_p9  ;;  %p689_p3 = por %p688_p7, %p687_p8 }
  0x47   : > { %p690_p6 = pnand %p689_p3, %p683_p11 }
  0x49   : > { %693 = shalt.err (!%p690_p6)
}
  0x4a   : > { %566 = dma.hbm_to_vmem [thread:$0]  (!%p880_p0), %s925_s16, 32, %s184_s19, %s169_s30  }
  0x4b   : > { %p1085_p13 = scmp.ne.s32.totalorder %s1084_s29, 0 }
  0x4c   : > { %s950_s15 = sand.u32 (!%p1085_p13), 1, %s764_s10   ;;  %p1086_p5 = scmp.ne.s32.totalorder (!%p1085_p13), %s1078_s21, 0 }
  0x4d   : > { %192 = sbr.rel (%p1085_p13) target bundleno = 180 (0xb4), region = 28  ;;  %s543_s18 = sshll.u32 (!%p1085_p13), %s950_s15, 3 }
  0x4e   : > { %s195_s4 = scalar_lea.sflag (!%p1085_p13), [#allocation3], %s950_s15  ;;  %s198_s6 = scalar_lea.vmem (!%p1085_p13), [#allocation2], %s543_s18 }
  0x54   : > { %747 = dma.done.wait (%p1086_p5), %s195_s4, 128  }
  0x55   : > { %749 = vsyncadd (%p1086_p5), %s195_s4, 4294967168  ;;  %s544_s5 = sshll.u32 %s950_s15, 1  ;;  %s204_s29 = scalar_lea.sflag [#allocation6], %s950_s15 }
  0x56   : > { %s207_s16 = scalar_lea.vmem [#allocation5], %s544_s5 }
  0x57   : > { %751 = dma.done.wait (%p1086_p5), %s204_s29, 32  }
  0x58   : > { %753 = vsyncadd (%p1086_p5), %s204_s29, 4294967264  ;;  %v282_v0 = vlaneseq  ;;  %s968_s19 = scalar_lea.vmem [#allocation7], %s544_s5  ;;  %v784_v2 = vmov 0.0   ;;  %vm243_vm1 = vcmask 1043456   ;;  %v238_v3 = vld [vmem:[%s198_s6] sm:$0xff]  ;;  %s553_s21 = sshll.u32 %s772_s12, 5 }
  0x59   : > { %v241_v4 = vcombine.high %v238_v3, %v238_v3  ;;  %v244_v5 = vsel %vm243_vm1, %v238_v3, -inf  ;;  %v985_v22 = vld [vmem:[%s207_s16] sm:$0x3]  ;;  %s419_s30 = sshll.u32 %s968_s19, 4  ;;  %s1020_s27 = scalar_lea.hbm %s1074_s2, %s553_s21  ;;  %s1022_s30 = int_to_ptr.vmem [resolvable:$true] %s419_s30 }
  0x5a   : > { %vm964_vm0 = vcmp.lt.s32.totalorder %v282_v0, 256  ;;  %v245_v6 = vrot.slane %v244_v5, 4  ;;  %v978_v18 = vshrl.u32 %v282_v0, 7  ;;  %vm342_vm4 = vcmp.eq.s32.totalorder %v985_v22, 0  ;;  %s404_s28 = scalar_lea.sflag [#allocation4], %s950_s15  ;;  %s694_s25 = scalar_lea.vmem %s1022_s30, 32 }
  0x5b   : > { %377 = vst.msk [vmem:[%s968_s19] sm:$0x3] %vm964_vm0, %v784_v2  ;;  %v251_v7 = vsel %vm243_vm1, %v241_v4, -inf  ;;  %vm344_vm5 = vcmp.eq.s32.totalorder %v985_v22, 1  ;;  %vm346_vm6 = vcmp.eq.s32.totalorder %v985_v22, 2  ;;  %vm348_vm7 = vcmp.eq.s32.totalorder %v985_v22, 3  ;;  %p695_p8 = scmp.ne.s32.totalorder %s1022_s30, %s694_s25 }
  0x5c   : > { %v246_v8 = vmax.f32 %v244_v5, %v245_v6  ;;  %v252_v9 = vrot.slane %v251_v7, 4  ;;  %v286_v21 = vsub.s32 0, %v978_v18  ;;  %v290_v24 = vsub.s32 1, %v978_v18  ;;  %p1089_p0 = scmp.ne.s32.totalorder %s1079_s22, 0  ;;  %s786_s12 = smov [#allocation7]  }
  0x5d   : > { %s698_s3 = sshll.u32 %s786_s12, 4  ;;  %s699_s3 = int_to_ptr.vmem [resolvable:$false] %s698_s3 }
  0x5e   : > { %v247_v10 = vrot.slane %v246_v8, 2  ;;  %v253_v11 = vmax.f32 %v251_v7, %v252_v9  ;;  %v287_v26 = vrot.slane %v985_v22, %v286_v21  ;;  %v291_v27 = vrot.slane %v985_v22, %v290_v24  ;;  %p696_p7 = pnand %p695_p8, %p1089_p0  ;;  %s700_s7 = scalar_lea.vmem %s699_s3, 64 }
  0x5f   : > { %v343_v7 = vsel %vm342_vm4, 0.1, %v784_v2  ;;  %p701_p10 = scmp.lt.s32.totalorder %s1022_s30, %s699_s3  ;;  %p702_p12 = scmp.lt.s32.totalorder %s700_s7, %s694_s25 }
  0x60   : > { %v248_v12 = vmax.f32 %v246_v8, %v247_v10  ;;  %v254_v13 = vrot.slane %v253_v11, 2  ;;  %vm292_vm2 = vcmp.eq.s32.totalorder %v978_v18, %v287_v26  ;;  %vm293_vm3 = vcmp.eq.s32.totalorder %v978_v18, %v291_v27  ;;  %p697_p4 = pneg %p696_p7 }
  0x61   : > { %v294_v28 = vsel %vm292_vm2, %v238_v3, 0.0  ;;  %v295_v29 = vsel %vm293_vm3, %v241_v4, 0.0  ;;  %p703_p1 = por %p702_p12, %p701_p10 }
  0x62   : > { %v249_v14 = vrot.slane %v248_v12, 1  ;;  %v255_v15 = vmax.f32 %v253_v11, %v254_v13  ;;  %v296_v30 = vsel %vm243_vm1, %v294_v28, 0.0  ;;  %v303_v31 = vsel %vm243_vm1, %v295_v29, 0.0 }
  0x63   : > { %v297_v32 = vrot.slane %v296_v30, 4  ;;  %v304_v36 = vrot.slane %v303_v31, 4  ;;  %v345_v11 = vsel %vm344_vm5, 0.2, %v343_v7  ;;  %p704_p2 = pnand %p703_p1, %p697_p4 }
  0x64   : > { %v976_v16 = vmax.f32 %v248_v12, %v249_v14  ;;  %v256_v17 = vrot.slane %v255_v15, 1 }
  0x65   : > { %v298_v41 = vadd.f32 %v297_v32, %v296_v30  ;;  %v305_v47 = vadd.f32 %v304_v36, %v303_v31 }
  0x66   : > { %v980_v19 = vmax.f32 %v255_v15, %v256_v17  ;;  %v347_v15 = vsel %vm346_vm6, 0.3, %v345_v11 }
  0x67   : > { %v299_v52 = vrot.slane %v298_v41, 2  ;;  %v306_v57 = vrot.slane %v305_v47, 2  ;;  %v349_v2 = vsel %vm348_vm7, 0.4, %v347_v15 }
  0x68   : > { %v260_v20 = vcombine.low %v976_v16, %v980_v19  ;;  %v354_v32 = vrot.slane %v349_v2, %v286_v21 }
  0x69   : > { %v300_v62 = vadd.f32 %v299_v52, %v298_v41  ;;  %v307_v4 = vadd.f32 %v306_v57, %v305_v47 }
  0x6a   : > { %v262_v23 = vsub.f32 %v238_v3, %v260_v20 }
  0x6b   : > { %v301_v8 = vrot.slane %v300_v62, 1  ;;  %v308_v10 = vrot.slane %v307_v4, 1 }
  0x6c   : > { %v263_v25 = vmul.f32 1.442695, %v262_v23 }
  0x6d   : > { %v302_v13 = vadd.f32 %v301_v8, %v300_v62  ;;  %v309_v17 = vadd.f32 %v308_v10, %v307_v4 }
  0x6e   : > { %624 = vpow2.f32 %v263_v25 }
  0x6f   : > { %v326_v23 = vsub.f32 %v302_v13, %v976_v16  ;;  %v327_v28 = vsub.f32 %v309_v17, %v980_v19  ;;  %v358_v16 = vrot.slane %v349_v2, %v290_v24 }
  0x78   : > { %v625_v33 = vpop.eup %624 }
  0x79   : > { %v266_v34 = vcombine.high %v625_v33, %v625_v33  ;;  %v268_v35 = vsel %vm243_vm1, %v625_v33, 0.0  ;;  %v310_v37 = vsel %vm292_vm2, %v625_v33, 0.0 }
  0x7a   : > { %v269_v38 = vrot.slane %v268_v35, 4  ;;  %v312_v39 = vsel %vm243_vm1, %v310_v37, 0.0  ;;  %v785_v37 = vmov 1966171168  }
  0x7b   : > { %v275_v40 = vsel %vm243_vm1, %v266_v34, 0.0  ;;  %v311_v42 = vsel %vm293_vm3, %v266_v34, 0.0  ;;  %v313_v43 = vrot.slane %v312_v39, 4 }
  0x7c   : > { %v270_v44 = vadd.f32 %v269_v38, %v268_v35  ;;  %v276_v45 = vrot.slane %v275_v40, 4  ;;  %v319_v46 = vsel %vm243_vm1, %v311_v42, 0.0  ;;  %v383_v38 = vunpack.c.l.s4 %v785_v37 }
  0x7d   : > { %v314_v48 = vadd.f32 %v313_v43, %v312_v39  ;;  %v320_v49 = vrot.slane %v319_v46, 4 }
  0x7e   : > { %v271_v50 = vrot.slane %v270_v44, 2  ;;  %v277_v51 = vadd.f32 %v276_v45, %v275_v40 }
  0x7f   : > { %v315_v53 = vrot.slane %v314_v48, 2  ;;  %v321_v54 = vadd.f32 %v320_v49, %v319_v46 }
  0x80   : > { %v272_v55 = vadd.f32 %v271_v50, %v270_v44  ;;  %v278_v56 = vrot.slane %v277_v51, 2  ;;  %v384_v44 = vunpack.c.0.s8 %v383_v38  ;;  %v378_v50 = vld [vmem:[%s968_s19] sm:$0x3] }
  0x81   : > { %v322_v58 = vrot.slane %v321_v54, 2  ;;  %v316_v61 = vadd.f32 %v315_v53, %v314_v48 }
  0x82   : > { %v273_v59 = vrot.slane %v272_v55, 1  ;;  %v279_v60 = vadd.f32 %v278_v56, %v277_v51  ;;  %v387_v24 = vsub.s32 %v384_v44, %v978_v18 }
  0x83   : > { %v323_v3 = vadd.f32 %v322_v58, %v321_v54  ;;  %v317_v6 = vrot.slane %v316_v61, 1 }
  0x84   : > { %v274_v63 = vadd.f32 %v273_v59, %v272_v55  ;;  %v280_v0 = vrot.slane %v279_v60, 1 }
  0x85   : > { %v324_v9 = vrot.slane %v323_v3, 1  ;;  %v318_v12 = vadd.f32 %v317_v6, %v316_v61 }
  0x86   : > { %v281_v5 = vadd.f32 %v280_v0, %v279_v60  ;;  %626 = vlog2.f32 %v274_v63 }
  0x87   : > { %628 = vrcp.f32 %v274_v63  ;;  %v325_v14 = vadd.f32 %v324_v9, %v323_v3  ;;  %v336_v20 = vsub.f32 %v274_v63, %v318_v12 }
  0x88   : > { %630 = vlog2.f32 %v281_v5 }
  0x89   : > { %632 = vrcp.f32 %v281_v5  ;;  %v337_v26 = vsub.f32 %v281_v5, %v325_v14 }
  0x90   : > { %v627_v25 = vpop.eup %626 }
  0x91   : > { %v629_v27 = vpop.eup %628  ;;  %v329_v29 = vmul.f32 0.6931472, %v627_v25 }
  0x92   : > { %v631_v30 = vpop.eup %630  ;;  %v338_v31 = vmul.f32 %v629_v27, %v336_v20 }
  0x93   : > { %v633_v33 = vpop.eup %632  ;;  %v331_v34 = vmul.f32 0.6931472, %v631_v30  ;;  %v332_v35 = vsub.f32 %v326_v23, %v329_v29 }
  0x94   : > { %v339_v22 = vmul.f32 %v633_v33, %v337_v26  ;;  %v340_v36 = vmax.f32 %v338_v31, 0.0 }
  0x95   : > { %v333_v39 = vsub.f32 %v327_v28, %v331_v34  ;;  %v361_v40 = vmul.f32 %v354_v32, %v332_v35 }
  0x96   : > { %v341_v19 = vmax.f32 %v339_v22, 0.0  ;;  %v363_v41 = vmul.f32 %v340_v36, %v340_v36 }
  0x97   : > { %v362_v42 = vmul.f32 %v358_v16, %v333_v39 }
  0x98   : > { %v364_v43 = vmul.f32 %v341_v19, %v341_v19  ;;  %v365_v21 = vsub.f32 0.0, %v363_v41 }
  0x9a   : > { %v366_v45 = vsub.f32 0.0, %v364_v43  ;;  %v367_v46 = vmul.f32 %v365_v21, %v361_v40 }
  0x9c   : > { %v368_v47 = vmul.f32 %v366_v45, %v362_v42 }
  0x9e   : > { %v381_v48 = vcombine.low %v367_v46, %v368_v47 }
  0xa0   : > { %v388_v49 = vrot.slane %v381_v48, %v387_v24 }
  0xa2   : > { %v395_v51 = vrot.slane %v388_v49, %v387_v24 }
  0xa4   : > { %v397_v52 = vadd.f32 %v395_v51, %v378_v50 }
  0xa6   : > { %402 = vst.msk [vmem:[%s968_s19] sm:$0x3] %vm964_vm0, %v397_v52 }
  0xa7   : > { %707 = shalt.err (!%p704_p2)
}
  0xa8   : > { %s708_s8 = scalar_lea.hbm %s1020_s27, 32  ;;  %s712_s4 = scalar_lea.hbm %s1074_s2, 64 }
  0xa9   : > { %p709_p9 = scmp.ne.s32.totalorder %s1020_s27, %s708_s8  ;;  %p713_p6 = scmp.lt.u32.totalorder %s1020_s27, %s1074_s2 }
  0xaa   : > { %p714_p13 = scmp.lt.u32.totalorder %s712_s4, %s708_s8  ;;  %p716_p8 = scmp.lt.u32.totalorder %s708_s8, %s1020_s27 }
  0xab   : > { %p710_p11 = pnand %p709_p9, %p1089_p0 }
  0xac   : > { %p715_p5 = por %p714_p13, %p713_p6 }
  0xad   : > { %p711_p3 = pneg %p710_p11 }
  0xae   : > { %p717_p7 = por %p716_p8, %p715_p5 }
  0xb0   : > { %p718_p4 = pnand %p717_p7, %p711_p3 }
  0xb2   : > { %721 = shalt.err (!%p718_p4)
}
  0xb3   : > { %558 = dma.vmem_to_hbm [thread:$0]  (%p1089_p0), %s1022_s30, 32, %s1020_s27, %s404_s28  }
  0xb4 PF: > { %s431_s29 = sand.u32 1, %s760_s9   ;;  %p1090_p10 = scmp.ne.s32.totalorder %s1080_s24, 0 }
  0xb5   : > { %p1091_p12 = scmp.ge.s32.totalorder %s780_s14, 2  ;;  %s432_s16 = scalar_lea.sflag [#allocation4], %s431_s29 }
  0xb7   : > { %p568_p1 = pnand %p1091_p12, %p1090_p10 }
  0xb9   : > { %755 = dma.done.wait (!%p568_p1), %s432_s16, 32  }
  0xba   : > { %757 = vsyncadd (!%p568_p1), %s432_s16, 4294967264  ;;  %s21_s14 = sadd.s32 1, %s780_s14   ;;  %s1092_s9 = smov %s764_s10 }
  0xbb   : > { %p18_p2 = scmp.ge.s32.totalorder %s21_s14, 4   ;;  %s1093_s10 = smov %s768_s11 }
  0xbc   : > { %s1094_s11 = smov %s858_s23  ;;  %s1095_s12 = smov %s776_s13 }
  0xbd   : > { %s1096_s13 = smov %s1098_s17  ;;  %20 = sbr.rel (!%p18_p2) target bundleno = 8 (0x8), region = 90 }
  0xc4   :  { %437 = vsyncpa [#allocation3], 1 }
  0xc5   :  { %439 = vsyncpa [#allocation3 + $0x1], 1 }
  0xc6   :  { %440 = vsyncpa [#allocation6], 1 }
  0xc7   :  { %442 = vsyncpa [#allocation6 + $0x1], 1 }
  0xc8   :  { %443 = vsyncpa [#allocation4], 1 }
  0xc9   :  { %445 = vsyncpa [#allocation4 + $0x1], 1 }

</bundles_post_ra>
